<compile_context>
chip_gen: v7x
topology: tpu7x:2x2x1
jax: 0.10.0
libtpu: 0.0.40
codegen_flags: <defaults>
</compile_context>

<pallas_src>
import jax
import jax.numpy as jnp
from jax.experimental import pallas as pl
from jax.experimental.pallas import tpu as pltpu


def _mask_mul_kernel(x_ref, m_ref, o_ref):
    # x_ref: (TM, TN) tile of the (N*C, T*H*W) view.
    # m_ref: (TM, 1) per-row keep*scale mask, broadcast over lanes.
    o_ref[...] = x_ref[...] * m_ref[...]


def _pick_tiles(nc, thw):
    # Rows: multiple of 8 (or full extent if small); columns: multiple of 128
    # (or full extent if small), kept lane-dense (>=128) and big enough to pipeline.
    tm = nc if nc <= 128 else 128
    tn = thw if thw <= 1024 else 1024
    return tm, tn


def add_spatial_mask(x, key, *, thres=0.3, training=True):
    """AddSpatialMask.forward for the DROP / DROP_3D path. net == nn.Identity."""
    if not training or thres == 0.0:
        # Dropout is identity in eval mode (or with p=0); net == identity.
        return x
    assert 0.0 <= thres < 1.0, "Dropout3d with thres >= 1.0 is degenerate"

    n, c, t, h, w = x.shape
    nc = n * c
    thw = t * h * w
    x2 = x.reshape(nc, thw)

    # Per-(n, c) Bernoulli keep mask, with inverted-dropout scaling baked in.
    keep = jax.random.uniform(key, (nc, 1), dtype=jnp.float32) >= thres
    scale = 1.0 / (1.0 - thres)
    mask = (keep.astype(jnp.float32) * scale).astype(x.dtype)

    tm, tn = _pick_tiles(nc, thw)
    grid = (pl.cdiv(nc, tm), pl.cdiv(thw, tn))

    out = pl.pallas_call(
        _mask_mul_kernel,
        out_shape=jax.ShapeDtypeStruct((nc, thw), x.dtype),
        grid=grid,
        in_specs=[
            pl.BlockSpec((tm, tn), lambda i, j: (i, j)),   # x tile
            pl.BlockSpec((tm, 1), lambda i, j: (i, 0)),    # per-row mask
        ],
        out_specs=pl.BlockSpec((tm, tn), lambda i, j: (i, j)),
        compiler_params=pltpu.CompilerParams(
            dimension_semantics=("parallel", "parallel")),
    )(x2, mask)

    # net == identity: self.net(x.view(n, c, t, h, w))
    return out.reshape(n, c, t, h, w)


if __name__ == "__main__":
    root = jax.random.PRNGKey(0)
    kx, kmask = jax.random.split(root)

    N, C, T, H, W = 2, 4, 8, 16, 16
    x = jax.random.normal(kx, (N, C, T, H, W), dtype=jnp.float32)

    thres = 0.3
    y = add_spatial_mask(x, kmask, thres=thres, training=True)
    y = jax.block_until_ready(y)

    # Sanity: every (n, c) channel volume is either all-zero or exactly x / (1 - thres).
    xr = x.reshape(N * C, -1)
    yr = y.reshape(N * C, -1)
    scale = 1.0 / (1.0 - thres)
    for r in range(N * C):
        dropped = bool(jnp.all(yr[r] == 0.0))
        kept = bool(jnp.allclose(yr[r], xr[r] * scale, atol=1e-5))
        assert dropped or kept, f"row {r}: not a valid Dropout3d output"
    assert y.shape == x.shape and y.dtype == x.dtype

    # Eval-mode path is identity.
    y_eval = add_spatial_mask(x, kmask, thres=thres, training=False)
    assert bool(jnp.all(y_eval == x))

    print("KERNEL_OK")
</pallas_src>

<mosaic_0001>
module attributes {stable_mosaic.version = 11 : i64} {
  func.func @_mask_mul_kernel(%arg0: i32, %arg1: i32, %arg2: memref<8x1024xf32, #tpu.memory_space<vmem>>, %arg3: memref<8x1xf32, #tpu.memory_space<vmem>>, %arg4: memref<8x1024xf32, #tpu.memory_space<vmem>>) attributes {dimension_semantics = [#tpu.dimension_semantics<parallel>, #tpu.dimension_semantics<parallel>], iteration_bounds = array<i64: 1, 2>, scalar_prefetch = 0 : i64, scratch_operands = 0 : i64, tpu.core_type = #tpu.core_type<tc>, window_params = [{transform_indices = @transform_0, window_bounds = array<i64: 8, 1024>}, {transform_indices = @transform_1, window_bounds = array<i64: 8, 1>}, {transform_indices = @transform_2, window_bounds = array<i64: 8, 1024>}]} {
    %c0 = arith.constant 0 : index
    %c0_0 = arith.constant 0 : index
    %0 = vector.load %arg2[%c0, %c0_0] : memref<8x1024xf32, #tpu.memory_space<vmem>>, vector<8x1024xf32>
    %c0_1 = arith.constant 0 : index
    %c0_2 = arith.constant 0 : index
    %1 = vector.load %arg3[%c0_1, %c0_2] : memref<8x1xf32, #tpu.memory_space<vmem>>, vector<8x1xf32>
    %2 = vector.broadcast %1 : vector<8x1xf32> to vector<8x1024xf32>
    %3 = arith.mulf %0, %2 : vector<8x1024xf32>
    %c0_3 = arith.constant 0 : index
    %c0_4 = arith.constant 0 : index
    %4 = vector.load %arg4[%c0_3, %c0_4] : memref<8x1024xf32, #tpu.memory_space<vmem>>, vector<8x1024xf32>
    tpu.vector_store %arg4[%c0_3, %c0_4], %3 {strides = array<i32>} : memref<8x1024xf32, #tpu.memory_space<vmem>>, vector<8x1024xf32>,
    return
  }
  func.func @transform_0(%arg0: i32, %arg1: i32) -> (i32, i32) {
    %c0_i32 = arith.constant 0 : i32
    return %arg0, %arg1 : i32, i32
  }
  func.func @transform_1(%arg0: i32, %arg1: i32) -> (i32, i32) {
    %c0_i32 = arith.constant 0 : i32
    %c0_i32_0 = arith.constant 0 : i32
    return %arg0, %c0_i32 : i32, i32
  }
  func.func @transform_2(%arg0: i32, %arg1: i32) -> (i32, i32) {
    %c0_i32 = arith.constant 0 : i32
    return %arg0, %arg1 : i32, i32
  }
}

</mosaic_0001>

<bundles_post_ra>
// kernel: tpu_custom_call.1
= control target key start
LH: loop header
LB: loop body
LE: loop exit
PB: predicated region body
PF: predicated region fallthrough
CT: control target
= control target key end

     0   :  { %7 = vsyncpa [#allocation3], 0  ;;  %s732_s0 = inlined_call_operand.hbm [shape: f32[8,2048], index: 0, kind: input, shape index: {}]   ;;  %s733_s1 = inlined_call_operand.vmem [shape: f32[8,1], index: 1, kind: input, shape index: {}]   ;;  %s734_s2 = inlined_call_operand.hbm [shape: f32[8,2048], index: 2, kind: output, shape index: {}]  }
   0x1   :  { %9 = vsyncpa [#allocation3 + $0x1], 0 }
   0x2   :  { %10 = vsyncpa [#allocation4], 0 }
   0x3   :  { %12 = vsyncpa [#allocation4 + $0x1], 0  ;;  %s557_s9 = smov 0   ;;  %s559_s10 = smov 0  }
   0x4   :  { %s561_s11 = smov 0   ;;  %s563_s12 = smov 0  }
   0x5   :  { %s565_s13 = smov 0   ;;  %s567_s14 = smov 0  }
   0x6 LB: > { %s343_s15 = sadd.s32 4294967295, %s537_s14   ;;  %s344_s16 = sadd.s32 4294967294, %s537_s14   ;;  %s537_s14 = sphi %s567_s14, %s18_s14   ;;  %s533_s13 = sphi %s565_s13, %s750_s13   ;;  %s529_s12 = sphi %s563_s12, %s749_s12   ;;  %s525_s11 = sphi %s561_s11, %s748_s11   ;;  %s521_s10 = sphi %s559_s10, %s747_s10   ;;  %s517_s9 = sphi %s557_s9, %s746_s9  }
   0x7   : > { %s27_s17 = sadd.s32 1, %s533_s13  ;;  %s39_s18 = sadd.s32 1, %s525_s11 }
   0x8   : > { %p28_p0 = scmp.ge.s32.totalorder %s27_s17, 2  ;;  %p46_p1 = scmp.ne.s32.totalorder %s525_s11, %s521_s10 }
   0x9   : > { %p47_p2 = scmp.eq.s32.totalorder %s537_s14, 0  ;;  %p52_p3 = scmp.ne.s32.totalorder %s521_s10, %s517_s9 }
   0xa   : > { %s752_s17 = smov (%p28_p0, %s27_s17), 0  ;;  %p53_p5 = scmp.eq.s32.totalorder %s343_s15, 0 }
   0xb   : > { %p598_p4 = por %p47_p2, %p46_p1  ;;  %s35_s20 = ssub.s32 %s533_s13, %s752_s17 }
   0xc   : > { %p104_p6 = scmp.eq.s32.totalorder %s343_s15, 1  ;;  %p37_p7 = scmp.eq.s32.totalorder %s35_s20, 0 }
   0xd   : > { %p604_p8 = por %p53_p5, %p52_p3  ;;  %p110_p10 = scmp.eq.s32.totalorder %s344_s16, 1 }
   0xe   : > { %p608_p9 = por %p104_p6, %p46_p1  ;;  %p373_p13 = scmp.lt.s32.totalorder %s537_s14, 2 }
   0xf   : > { %s613_s23 = scalar_select %p37_p7, %s525_s11, %s39_s18  }
  0x10   : > { %s738_s22 = scalar_select %p608_p9, 1, 0 }
  0x11   : > { %p615_p11 = por %p110_p10, %p52_p3  ;;  %s137_s25 = sand.u32 1, %s525_s11  }
  0x12   : > { %s348_s26 = sshll.u32 %s137_s25, 6  ;;  %s359_s27 = sshll.u32 %s533_s13, 10 }
  0x13   : > { %s739_s24 = scalar_select %p615_p11, 1, 0 }
  0x14   : > { %s626_s30 = scalar_lea.hbm %s732_s0, %s359_s27  ;;  %s141_s3 = scalar_lea.vmem [#allocation2], %s348_s26 }
  0x15   : > { %s151_s4 = sshll.u32 %s141_s3, 4  ;;  %p632_p0 = pnand %p373_p13, %p598_p4  ;;  %s628_s4 = int_to_ptr.vmem [resolvable:$true] %s151_s4 }
  0x16   : > { %s138_s6 = scalar_lea.sflag [#allocation3], %s137_s25  ;;  %s425_s7 = scalar_lea.hbm %s626_s30, 1024 }
  0x17   : > { %p426_p3 = scmp.ne.s32.totalorder %s626_s30, %s425_s7  ;;  %p427_p5 = pneg %p632_p0 }
  0x18   : > { %s430_s16 = scalar_lea.hbm %s732_s0, 2048  ;;  %p431_p4 = scmp.lt.u32.totalorder %s626_s30, %s732_s0 }
  0x19   : > { %p428_p6 = pnand %p427_p5, %p426_p3  ;;  %p432_p10 = scmp.lt.u32.totalorder %s430_s16, %s425_s7 }
  0x1a   : > { %p434_p12 = scmp.lt.u32.totalorder %s425_s7, %s626_s30 }
  0x1b   : > { %p429_p7 = pneg %p428_p6  ;;  %p433_p13 = por %p432_p10, %p431_p4 }
  0x1d   : > { %p435_p1 = por %p434_p12, %p433_p13 }
  0x1f   : > { %p436_p2 = pnand %p435_p1, %p429_p7 }
  0x21   : > { %439 = shalt.err (!%p436_p2)
}
  0x22   : > { %s440_s20 = scalar_lea.vmem %s628_s4, 1024  ;;  %s539_s25 = smov [#allocation2]  }
  0x23   : > { %p441_p3 = scmp.ne.s32.totalorder %s628_s4, %s440_s20  ;;  %s445_s26 = sshll.u32 %s539_s25, 4  ;;  %s446_s26 = int_to_ptr.vmem [resolvable:$false] %s445_s26 }
  0x24   : > { %s447_s27 = scalar_lea.vmem %s446_s26, 2048  ;;  %p448_p9 = scmp.lt.s32.totalorder %s628_s4, %s446_s26 }
  0x25   : > { %p443_p6 = pnand %p441_p3, %p427_p5  ;;  %p449_p4 = scmp.lt.s32.totalorder %s447_s27, %s440_s20 }
  0x27   : > { %p444_p11 = pneg %p443_p6  ;;  %p450_p10 = por %p449_p4, %p448_p9 }
  0x29   : > { %p451_p12 = pnand %p450_p10, %p444_p11 }
  0x2b   : > { %454 = shalt.err (!%p451_p12)
}
  0x2c   : > { %368 = dma.hbm_to_vmem [thread:$0]  (!%p632_p0), %s626_s30, 1024, %s628_s4, %s138_s6  }
  0x2d   : > { %p741_p1 = scmp.lt.s32.totalorder %s537_s14, 3  ;;  %p742_p2 = scmp.ge.s32.totalorder %s537_s14, 1 }
  0x2f   : > { %p157_p5 = pnand %p742_p2, %p741_p1 }
  0x30   : > { %s668_s28 = sand.u32 (!%p157_p5), 1, %s521_s10  }
  0x31   : > { %160 = sbr.rel (%p157_p5) target bundleno = 206 (0xce), region = 28  ;;  %s352_s29 = sshll.u32 (!%p157_p5), %s668_s28, 6 }
  0x32   : > { %s163_s3 = scalar_lea.sflag (!%p157_p5), [#allocation3], %s668_s28  ;;  %s166_s7 = scalar_lea.vmem (!%p157_p5), [#allocation2], %s352_s29 }
  0x38   : > { %508 = dma.done.wait (%p604_p8), %s163_s3, 1024  }
  0x39   : > { %510 = vsyncadd (%p604_p8), %s163_s3, 4294966272  ;;  %v540_v0 = vmov 0   ;;  %v205_v1 = vld [vmem:[%s733_s1] sm:$0xff]  ;;  %v198_v3 = vld [vmem:[%s166_s7 + $0x8] sm:$0xff]  ;;  %s360_s5 = sshll.u32 %s529_s12, 10  ;;  %s190_s6 = scalar_lea.vmem [#allocation5], %s352_s29 }
  0x3a   : > { %424 = vset.pattern.permute.xlu0 %v540_v0  ;;  %v197_v2 = vld [vmem:[%s166_s7] sm:$0xff]  ;;  %v199_v4 = vld [vmem:[%s166_s7 + $0x10] sm:$0xff]  ;;  %v200_v5 = vld [vmem:[%s166_s7 + $0x18] sm:$0xff]  ;;  %s244_s21 = sshll.u32 %s190_s6, 4  ;;  %s683_s16 = scalar_lea.hbm %s734_s2, %s360_s5  ;;  %s685_s21 = int_to_ptr.vmem [resolvable:$true] %s244_s21 }
  0x3b   : > { %208 = vperm.xlu0 %424, %v205_v1   ;;  %v201_v6 = vld [vmem:[%s166_s7 + $0x20] sm:$0xff]  ;;  %v202_v7 = vld [vmem:[%s166_s7 + $0x28] sm:$0xff]  ;;  %v203_v8 = vld [vmem:[%s166_s7 + $0x30] sm:$0xff]  ;;  %s228_s12 = scalar_lea.sflag [#allocation4], %s668_s28  ;;  %s455_s18 = scalar_lea.vmem %s685_s21, 1024 }
  0x3c   : > { %v204_v9 = vld [vmem:[%s166_s7 + $0x38] sm:$0xff]  ;;  %p456_p8 = scmp.ne.s32.totalorder %s685_s21, %s455_s18  ;;  %p743_p9 = scmp.ne.s32.totalorder %s738_s22, 0 }
  0x3d   : > { %s541_s19 = smov [#allocation5]  }
  0x3e   : > { %p457_p11 = pnand %p456_p8, %p743_p9  ;;  %s459_s20 = sshll.u32 %s541_s19, 4  ;;  %s460_s20 = int_to_ptr.vmem [resolvable:$false] %s459_s20 }
  0x3f   : > { %s461_s25 = scalar_lea.vmem %s460_s20, 2048  ;;  %p462_p7 = scmp.lt.s32.totalorder %s685_s21, %s460_s20 }
  0x40   : > { %p458_p0 = pneg %p457_p11  ;;  %p463_p13 = scmp.lt.s32.totalorder %s461_s25, %s455_s18 }
  0x42   : > { %p464_p3 = por %p463_p13, %p462_p7 }
  0x44   : > { %p465_p6 = pnand %p464_p3, %p458_p0 }
  0xba   : > { %v209_v10 = vpop.permute.xlu0 %208 }
  0xbb   : > { %v211_v11 = vmul.f32 %v209_v10, %v197_v2  ;;  %v212_v12 = vmul.f32 %v209_v10, %v198_v3  ;;  %v213_v13 = vmul.f32 %v209_v10, %v199_v4  ;;  %v214_v14 = vmul.f32 %v209_v10, %v200_v5 }
  0xbc   : > { %v215_v15 = vmul.f32 %v209_v10, %v201_v6  ;;  %v216_v16 = vmul.f32 %v209_v10, %v202_v7  ;;  %v217_v17 = vmul.f32 %v209_v10, %v203_v8  ;;  %v218_v18 = vmul.f32 %v209_v10, %v204_v9 }
  0xbd   : > { %219 = vst [vmem:[%s190_s6] sm:$0xff] %v211_v11  ;;  %220 = vst [vmem:[%s190_s6 + $0x8] sm:$0xff] %v212_v12 }
  0xbe   : > { %221 = vst [vmem:[%s190_s6 + $0x10] sm:$0xff] %v213_v13  ;;  %222 = vst [vmem:[%s190_s6 + $0x18] sm:$0xff] %v214_v14 }
  0xbf   : > { %223 = vst [vmem:[%s190_s6 + $0x20] sm:$0xff] %v215_v15  ;;  %224 = vst [vmem:[%s190_s6 + $0x28] sm:$0xff] %v216_v16 }
  0xc0   : > { %225 = vst [vmem:[%s190_s6 + $0x30] sm:$0xff] %v217_v17  ;;  %226 = vst [vmem:[%s190_s6 + $0x38] sm:$0xff] %v218_v18 }
  0xc1   : > { %468 = shalt.err (!%p465_p6)
}
  0xc2   : > { %s469_s26 = scalar_lea.hbm %s683_s16, 1024  ;;  %s473_s29 = scalar_lea.hbm %s734_s2, 2048 }
  0xc3   : > { %p470_p4 = scmp.ne.s32.totalorder %s683_s16, %s469_s26  ;;  %p474_p1 = scmp.lt.u32.totalorder %s683_s16, %s734_s2 }
  0xc4   : > { %p475_p2 = scmp.lt.u32.totalorder %s473_s29, %s469_s26  ;;  %p477_p8 = scmp.lt.u32.totalorder %s469_s26, %s683_s16 }
  0xc5   : > { %p471_p10 = pnand %p470_p4, %p743_p9 }
  0xc6   : > { %p476_p5 = por %p475_p2, %p474_p1 }
  0xc7   : > { %p472_p12 = pneg %p471_p10 }
  0xc8   : > { %p478_p11 = por %p477_p8, %p476_p5 }
  0xca   : > { %p479_p0 = pnand %p478_p11, %p472_p12 }
  0xcc   : > { %482 = shalt.err (!%p479_p0)
}
  0xcd   : > { %363 = dma.vmem_to_hbm [thread:$0]  (%p743_p9), %s685_s21, 1024, %s683_s16, %s228_s12  }
  0xce PF: > { %s256_s30 = sand.u32 1, %s517_s9   ;;  %p744_p7 = scmp.ne.s32.totalorder %s739_s24, 0 }
  0xcf   : > { %p745_p13 = scmp.ge.s32.totalorder %s537_s14, 2  ;;  %s257_s4 = scalar_lea.sflag [#allocation4], %s256_s30 }
  0xd1   : > { %p370_p3 = pnand %p745_p13, %p744_p7 }
  0xd3   : > { %512 = dma.done.wait (!%p370_p3), %s257_s4, 1024  }
  0xd4   : > { %514 = vsyncadd (!%p370_p3), %s257_s4, 4294966272  ;;  %s18_s14 = sadd.s32 1, %s537_s14   ;;  %s746_s9 = smov %s521_s10 }
  0xd5   : > { %p15_p6 = scmp.ge.s32.totalorder %s18_s14, 4   ;;  %s747_s10 = smov %s525_s11 }
  0xd6   : > { %s748_s11 = smov %s613_s23  ;;  %s749_s12 = smov %s533_s13 }
  0xd7   : > { %s750_s13 = smov %s752_s17  ;;  %17 = sbr.rel (!%p15_p6) target bundleno = 6 (0x6), region = 76 }
  0xde   :  { %262 = vsyncpa [#allocation3], 1 }
  0xdf   :  { %264 = vsyncpa [#allocation3 + $0x1], 1 }
  0xe0   :  { %265 = vsyncpa [#allocation4], 1 }
  0xe1   :  { %267 = vsyncpa [#allocation4 + $0x1], 1 }

</bundles_post_ra>
